<compile_context>
chip_gen: v7x
topology: tpu7x:2x2x1
jax: 0.10.0
libtpu: 0.0.40
codegen_flags: <defaults>
</compile_context>

<pallas_src>
import jax
import jax.numpy as jnp
from jax.experimental import pallas as pl
from jax.experimental.pallas import tpu as pltpu


def _expanding_block_kernel(x_ref, s_ref, w1x_ref, w1s_ref, b1_ref, w2_ref, b2_ref, o_ref):
    # x_ref:   (1, Cin,  T)   input tile, channel-major, HW on lanes
    # s_ref:   (1, Csc,  T)   shortcut tile
    # w1x_ref: (Cout, Cin)    conv1 weight columns acting on `input`
    # w1s_ref: (Cout, Csc)    conv1 weight columns acting on `shortcut`
    # b1_ref:  (Cout, 1)
    # w2_ref:  (Cout, Cout)   conv2 weight
    # b2_ref:  (Cout, 1)
    # o_ref:   (1, Cout, T)
    x = x_ref[0]                                   # (Cin, T), native dtype
    s = s_ref[0]                                   # (Csc, T)

    # conv1 over the (virtual) channel concat == two MXU matmuls, f32 accumulation.
    y = jnp.dot(w1x_ref[...], x, preferred_element_type=jnp.float32)   # (Cout, T)
    y += jnp.dot(w1s_ref[...], s, preferred_element_type=jnp.float32)
    y += b1_ref[...].astype(jnp.float32)
    y = jnp.maximum(y, 0.0)                        # ReLU
    # dp1: Dropout is identity at inference.
    # TODO(synk): training-mode dropout would need pltpu.prng_seed/prng_random_bits masking.

    # conv2 (+ bias + ReLU); feed activations at the weight dtype so bf16 params stay bf16.
    z = jnp.dot(w2_ref[...], y.astype(w2_ref.dtype), preferred_element_type=jnp.float32)
    z += b2_ref[...].astype(jnp.float32)
    z = jnp.maximum(z, 0.0)
    # dp2: Dropout is identity at inference.

    o_ref[0] = z.astype(o_ref.dtype)


def _pick_lane_tile(hw, max_tile=2048):
    """Largest multiple of 128 that divides HW and is <= max_tile; else the full HW."""
    best = None
    t = 128
    while t <= min(hw, max_tile):
        if hw % t == 0:
            best = t
        t += 128
    return best if best is not None else hw


def expanding_block(x_nchw, shortcut_nchw, w1, b1, w2, b2, *, lane_tile=None):
    """Forward of _ExpandingBlock (eval mode).

    x_nchw: (N, Cin, H, W); shortcut_nchw: (N, Csc, H, W)
    w1: (Cout, Cin+Csc, 1, 1); b1: (Cout,); w2: (Cout, Cout, 1, 1); b2: (Cout,)
    Returns (N, Cout, H, W).
    """
    N, Cin, H, W = x_nchw.shape
    _, Csc, _, _ = shortcut_nchw.shape
    Cout = w1.shape[0]
    HW = H * W
    T = lane_tile if lane_tile is not None else _pick_lane_tile(HW)
    assert HW % T == 0, (HW, T)

    # Channel-major flatten: pure reshape, no transpose / extra HBM pass.
    x = x_nchw.reshape(N, Cin, HW)
    s = shortcut_nchw.reshape(N, Csc, HW)

    # 1x1-conv weights as matrices; split conv1 across the concat boundary (fuses torch.cat).
    w1m = w1.reshape(Cout, Cin + Csc)
    w1x = w1m[:, :Cin]
    w1s = w1m[:, Cin:]
    w2m = w2.reshape(Cout, Cout)
    b1c = b1.reshape(Cout, 1)
    b2c = b2.reshape(Cout, 1)

    itemsize = jnp.dtype(x_nchw.dtype).itemsize
    # Double-buffered per-step tiles + resident weights + headroom.
    vmem_bytes = 2 * (Cin + Csc + Cout) * T * itemsize
    vmem_bytes += (w1x.size + w1s.size + w2m.size + b1c.size + b2c.size) * 4
    vmem_bytes += 2 << 20
    vmem_limit = int(min(max(vmem_bytes, 16 << 20), 100 << 20))

    flops = 2 * N * HW * Cout * (Cin + Csc + Cout)
    bytes_accessed = int(
        sum(a.size * jnp.dtype(a.dtype).itemsize for a in (x, s, w1x, w1s, b1c, w2m, b2c))
        + N * Cout * HW * itemsize
    )

    out = pl.pallas_call(
        _expanding_block_kernel,
        out_shape=jax.ShapeDtypeStruct((N, Cout, HW), x_nchw.dtype),
        grid=(N, HW // T),
        in_specs=[
            pl.BlockSpec((1, Cin, T), lambda n, t: (n, 0, t)),
            pl.BlockSpec((1, Csc, T), lambda n, t: (n, 0, t)),
            pl.BlockSpec((Cout, Cin), lambda n, t: (0, 0)),
            pl.BlockSpec((Cout, Csc), lambda n, t: (0, 0)),
            pl.BlockSpec((Cout, 1), lambda n, t: (0, 0)),
            pl.BlockSpec((Cout, Cout), lambda n, t: (0, 0)),
            pl.BlockSpec((Cout, 1), lambda n, t: (0, 0)),
        ],
        out_specs=pl.BlockSpec((1, Cout, T), lambda n, t: (n, 0, t)),
        compiler_params=pltpu.CompilerParams(
            dimension_semantics=("parallel", "parallel"),
            vmem_limit_bytes=vmem_limit,
        ),
        cost_estimate=pl.CostEstimate(
            flops=flops, transcendentals=0, bytes_accessed=bytes_accessed
        ),
    )(x, s, w1x, w1s, b1c, w2m, b2c)

    return out.reshape(N, Cout, H, W)


def _reference(x, s, w1, b1, w2, b2):
    """Pure-JAX reference mirroring the concretized PyTorch forward (eval mode)."""
    Cout = w1.shape[0]
    cat = jnp.concatenate([x, s], axis=1)
    y = jnp.einsum("oc,nchw->nohw", w1.reshape(Cout, -1), cat) + b1.reshape(1, Cout, 1, 1)
    y = jnp.maximum(y, 0.0)
    z = jnp.einsum("oc,nchw->nohw", w2.reshape(Cout, Cout), y) + b2.reshape(1, Cout, 1, 1)
    z = jnp.maximum(z, 0.0)
    return z


if __name__ == "__main__":
    N, Cin, Csc, Cout, H, W = 2, 4, 4, 8, 16, 16

    key = jax.random.PRNGKey(0)
    kx, ks, k1, kb1, k2, kb2 = jax.random.split(key, 6)
    x = jax.random.normal(kx, (N, Cin, H, W), dtype=jnp.float32)
    shortcut = jax.random.normal(ks, (N, Csc, H, W), dtype=jnp.float32)
    w1 = jax.random.normal(k1, (Cout, Cin + Csc, 1, 1), dtype=jnp.float32) * 0.1
    b1 = 0.1 * jax.random.normal(kb1, (Cout,), dtype=jnp.float32)
    w2 = jax.random.normal(k2, (Cout, Cout, 1, 1), dtype=jnp.float32) * 0.1
    b2 = 0.1 * jax.random.normal(kb2, (Cout,), dtype=jnp.float32)

    # lane_tile=128 -> 2 spatial tiles per sample, exercising the (N, HW//T) grid.
    out = expanding_block(x, shortcut, w1, b1, w2, b2, lane_tile=128)
    out = jax.block_until_ready(out)

    ref = _reference(x, shortcut, w1, b1, w2, b2)
    assert out.shape == (N, Cout, H, W), out.shape
    assert jnp.allclose(out, ref, atol=1e-4, rtol=1e-4), float(jnp.max(jnp.abs(out - ref)))

    print("KERNEL_OK")
</pallas_src>

<mosaic_0001>
module attributes {stable_mosaic.version = 11 : i64} {
  func.func @_expanding_block_kernel(%arg0: i32, %arg1: i32, %arg2: memref<1x4x128xf32, #tpu.memory_space<vmem>>, %arg3: memref<1x4x128xf32, #tpu.memory_space<vmem>>, %arg4: memref<8x4xf32, #tpu.memory_space<vmem>>, %arg5: memref<8x4xf32, #tpu.memory_space<vmem>>, %arg6: memref<8x1xf32, #tpu.memory_space<vmem>>, %arg7: memref<8x8xf32, #tpu.memory_space<vmem>>, %arg8: memref<8x1xf32, #tpu.memory_space<vmem>>, %arg9: memref<1x8x128xf32, #tpu.memory_space<vmem>>) attributes {dimension_semantics = [#tpu.dimension_semantics<parallel>, #tpu.dimension_semantics<parallel>], iteration_bounds = array<i64: 2, 2>, scalar_prefetch = 0 : i64, scratch_operands = 0 : i64, tpu.core_type = #tpu.core_type<tc>, window_params = [{transform_indices = @transform_0, window_bounds = array<i64: 1, 4, 128>}, {transform_indices = @transform_1, window_bounds = array<i64: 1, 4, 128>}, {pipeline_mode = #tpu.pipeline_mode<synchronous>, transform_indices = @transform_2, window_bounds = array<i64: 8, 4>}, {pipeline_mode = #tpu.pipeline_mode<synchronous>, transform_indices = @transform_3, window_bounds = array<i64: 8, 4>}, {pipeline_mode = #tpu.pipeline_mode<synchronous>, transform_indices = @transform_4, window_bounds = array<i64: 8, 1>}, {pipeline_mode = #tpu.pipeline_mode<synchronous>, transform_indices = @transform_5, window_bounds = array<i64: 8, 8>}, {pipeline_mode = #tpu.pipeline_mode<synchronous>, transform_indices = @transform_6, window_bounds = array<i64: 8, 1>}, {transform_indices = @transform_7, window_bounds = array<i64: 1, 8, 128>}]} {
    %c0 = arith.constant 0 : index
    %c0_0 = arith.constant 0 : index
    %c0_1 = arith.constant 0 : index
    %0 = vector.load %arg2[%c0, %c0_0, %c0_1] : memref<1x4x128xf32, #tpu.memory_space<vmem>>, vector<1x4x128xf32>
    %1 = vector.shape_cast %0 : vector<1x4x128xf32> to vector<4x128xf32>
    %c0_2 = arith.constant 0 : index
    %c0_3 = arith.constant 0 : index
    %c0_4 = arith.constant 0 : index
    %2 = vector.load %arg3[%c0_2, %c0_3, %c0_4] : memref<1x4x128xf32, #tpu.memory_space<vmem>>, vector<1x4x128xf32>
    %3 = vector.shape_cast %2 : vector<1x4x128xf32> to vector<4x128xf32>
    %c0_5 = arith.constant 0 : index
    %c0_6 = arith.constant 0 : index
    %4 = vector.load %arg4[%c0_5, %c0_6] : memref<8x4xf32, #tpu.memory_space<vmem>>, vector<8x4xf32>
    %cst = arith.constant dense<0.000000e+00> : vector<8x128xf32>
    %5 = tpu.matmul %4, %1, %cst {dimension_numbers = #tpu.dot_dimension_numbers<[1], [0], [0], [1], [0, 0, 1, 1], [], []>} : vector<8x4xf32>, vector<4x128xf32>, vector<8x128xf32> -> vector<8x128xf32>
    %c0_7 = arith.constant 0 : index
    %c0_8 = arith.constant 0 : index
    %6 = vector.load %arg5[%c0_7, %c0_8] : memref<8x4xf32, #tpu.memory_space<vmem>>, vector<8x4xf32>
    %cst_9 = arith.constant dense<0.000000e+00> : vector<8x128xf32>
    %7 = tpu.matmul %6, %3, %cst_9 {dimension_numbers = #tpu.dot_dimension_numbers<[1], [0], [0], [1], [0, 0, 1, 1], [], []>} : vector<8x4xf32>, vector<4x128xf32>, vector<8x128xf32> -> vector<8x128xf32>
    %8 = arith.addf %5, %7 : vector<8x128xf32>
    %c0_10 = arith.constant 0 : index
    %c0_11 = arith.constant 0 : index
    %9 = vector.load %arg6[%c0_10, %c0_11] : memref<8x1xf32, #tpu.memory_space<vmem>>, vector<8x1xf32>
    %10 = vector.broadcast %9 : vector<8x1xf32> to vector<8x128xf32>
    %11 = arith.addf %8, %10 : vector<8x128xf32>
    %cst_12 = arith.constant 0.000000e+00 : f32
    %12 = vector.broadcast %cst_12 : f32 to vector<8x128xf32>
    %13 = arith.maximumf %11, %12 : vector<8x128xf32>
    %c0_13 = arith.constant 0 : index
    %c0_14 = arith.constant 0 : index
    %14 = vector.load %arg7[%c0_13, %c0_14] : memref<8x8xf32, #tpu.memory_space<vmem>>, vector<8x8xf32>
    %cst_15 = arith.constant dense<0.000000e+00> : vector<8x128xf32>
    %15 = tpu.matmul %14, %13, %cst_15 {dimension_numbers = #tpu.dot_dimension_numbers<[1], [0], [0], [1], [0, 0, 1, 1], [], []>} : vector<8x8xf32>, vector<8x128xf32>, vector<8x128xf32> -> vector<8x128xf32>
    %c0_16 = arith.constant 0 : index
    %c0_17 = arith.constant 0 : index
    %16 = vector.load %arg8[%c0_16, %c0_17] : memref<8x1xf32, #tpu.memory_space<vmem>>, vector<8x1xf32>
    %17 = vector.broadcast %16 : vector<8x1xf32> to vector<8x128xf32>
    %18 = arith.addf %15, %17 : vector<8x128xf32>
    %cst_18 = arith.constant 0.000000e+00 : f32
    %19 = vector.broadcast %cst_18 : f32 to vector<8x128xf32>
    %20 = arith.maximumf %18, %19 : vector<8x128xf32>
    %c0_19 = arith.constant 0 : index
    %c0_20 = arith.constant 0 : index
    %c0_21 = arith.constant 0 : index
    %21 = vector.load %arg9[%c0_19, %c0_20, %c0_21] : memref<1x8x128xf32, #tpu.memory_space<vmem>>, vector<1x8x128xf32>
    %22 = vector.shape_cast %21 : vector<1x8x128xf32> to vector<8x128xf32>
    %23 = vector.shape_cast %20 : vector<8x128xf32> to vector<1x8x128xf32>
    tpu.vector_store %arg9[%c0_19, %c0_20, %c0_21], %23 {strides = array<i32>} : memref<1x8x128xf32, #tpu.memory_space<vmem>>, vector<1x8x128xf32>,
    return
  }
  func.func @transform_0(%arg0: i32, %arg1: i32) -> (i32, i32, i32) {
    %c0_i32 = arith.constant 0 : i32
    %c0_i32_0 = arith.constant 0 : i32
    return %arg0, %c0_i32, %arg1 : i32, i32, i32
  }
  func.func @transform_1(%arg0: i32, %arg1: i32) -> (i32, i32, i32) {
    %c0_i32 = arith.constant 0 : i32
    %c0_i32_0 = arith.constant 0 : i32
    return %arg0, %c0_i32, %arg1 : i32, i32, i32
  }
  func.func @transform_2(%arg0: i32, %arg1: i32) -> (i32, i32) {
    %c0_i32 = arith.constant 0 : i32
    %c0_i32_0 = arith.constant 0 : i32
    %c0_i32_1 = arith.constant 0 : i32
    return %c0_i32, %c0_i32_0 : i32, i32
  }
  func.func @transform_3(%arg0: i32, %arg1: i32) -> (i32, i32) {
    %c0_i32 = arith.constant 0 : i32
    %c0_i32_0 = arith.constant 0 : i32
    %c0_i32_1 = arith.constant 0 : i32
    return %c0_i32, %c0_i32_0 : i32, i32
  }
  func.func @transform_4(%arg0: i32, %arg1: i32) -> (i32, i32) {
    %c0_i32 = arith.constant 0 : i32
    %c0_i32_0 = arith.constant 0 : i32
    %c0_i32_1 = arith.constant 0 : i32
    return %c0_i32, %c0_i32_0 : i32, i32
  }
  func.func @transform_5(%arg0: i32, %arg1: i32) -> (i32, i32) {
    %c0_i32 = arith.constant 0 : i32
    %c0_i32_0 = arith.constant 0 : i32
    %c0_i32_1 = arith.constant 0 : i32
    return %c0_i32, %c0_i32_0 : i32, i32
  }
  func.func @transform_6(%arg0: i32, %arg1: i32) -> (i32, i32) {
    %c0_i32 = arith.constant 0 : i32
    %c0_i32_0 = arith.constant 0 : i32
    %c0_i32_1 = arith.constant 0 : i32
    return %c0_i32, %c0_i32_0 : i32, i32
  }
  func.func @transform_7(%arg0: i32, %arg1: i32) -> (i32, i32, i32) {
    %c0_i32 = arith.constant 0 : i32
    %c0_i32_0 = arith.constant 0 : i32
    return %arg0, %c0_i32, %arg1 : i32, i32, i32
  }
}

</mosaic_0001>

<bundles_post_ra>
// kernel: tpu_custom_call.1
= control target key start
LH: loop header
LB: loop body
LE: loop exit
PB: predicated region body
PF: predicated region fallthrough
CT: control target
= control target key end

     0   :  { %s1108_s0 = inlined_call_operand.vmem [shape: f32[2,4,256], index: 0, kind: input, shape index: {}]   ;;  %s1109_s1 = inlined_call_operand.vmem [shape: f32[2,4,256], index: 1, kind: input, shape index: {}]   ;;  %s1110_s2 = inlined_call_operand.vmem [shape: f32[8,4], index: 2, kind: input, shape index: {}]   ;;  %s1111_s3 = inlined_call_operand.vmem [shape: f32[8,4], index: 3, kind: input, shape index: {}]   ;;  %s1112_s4 = inlined_call_operand.vmem [shape: f32[8,1], index: 4, kind: input, shape index: {}]   ;;  %s1113_s5 = inlined_call_operand.vmem [shape: f32[8,8], index: 5, kind: input, shape index: {}]   ;;  %s1114_s6 = inlined_call_operand.vmem [shape: f32[8,1], index: 6, kind: input, shape index: {}]   ;;  %s1115_s7 = inlined_call_operand.hbm [shape: f32[2,8,256], index: 7, kind: output, shape index: {}]  }
   0x1   :  { %1120 = sst [smem:[#allocation9_spill]] %s1112_s4 }
   0x2   :  { %12 = vsyncpa [#allocation3], 0 }
   0x3   :  { %14 = vsyncpa [#allocation3 + $0x1], 0  ;;  %s950_s24 = smov 0   ;;  %s952_s25 = smov 0  }
   0x4   :  { %s954_s26 = smov 0   ;;  %s956_s27 = smov 0  }
   0x5   :  { %s958_s28 = smov 0   ;;  %s960_s29 = smov 0  }
   0x6   :  { %s962_s30 = smov 0   ;;  %s964_s8 = smov 0  }
   0x7 LB: > { %1121 = sst [smem:[#allocation5_spill]] %s896_s29  ;;  %s694_s9 = sadd.s32 4294967295, %s904_s8   ;;  %s904_s8 = sphi %s964_s8, %s20_s8   ;;  %s900_s30 = sphi %s962_s30, %s1131_s30   ;;  %s896_s29 = sphi %s960_s29, %s1130_s29   ;;  %s892_s28 = sphi %s958_s28, %s1129_s28   ;;  %s888_s27 = sphi %s956_s27, %s1128_s27   ;;  %s884_s26 = sphi %s954_s26, %s1134_s26   ;;  %s880_s25 = sphi %s952_s25, %s1133_s25   ;;  %s876_s24 = sphi %s950_s24, %s1132_s24  }
   0x8   : > { %1122 = sst [smem:[#allocation6_spill]] %s900_s30  ;;  %s695_s10 = sadd.s32 4294967294, %s904_s8  }
   0x9   : > { %s29_s11 = sadd.s32 1, %s896_s29  ;;  %s32_s12 = sadd.s32 1, %s900_s30 }
   0xa   : > { %p30_p0 = scmp.ge.s32.totalorder %s29_s11, 2  ;;  %p212_p1 = scmp.ne.s32.totalorder %s884_s26, %s880_s25 }
   0xb   : > { %p213_p2 = scmp.eq.s32.totalorder %s694_s9, 3  ;;  %p218_p5 = scmp.ne.s32.totalorder %s880_s25, %s876_s24 }
   0xc   : > { %s1136_s11 = smov (%p30_p0, %s29_s11), 0  ;;  %s1138_s12 = smov (!%p30_p0, %s32_s12), %s900_s30 }
   0xd   : > { %1123 = sst [smem:[#allocation7_spill]] %s1136_s11  ;;  %s198_s13 = ssub.s32 %s896_s29, %s1136_s11 }
   0xe   : > { %p1001_p3 = por %p213_p2, %p212_p1  ;;  %p34_p4 = scmp.ge.s32.totalorder %s1138_s12, 2 }
   0xf   : > { %p219_p6 = scmp.eq.s32.totalorder %s695_s10, 3  ;;  %p698_p7 = scmp.ge.s32.totalorder %s904_s8, 1 }
  0x10   : > { %s1140_s12 = smov (%p34_p4, %s1138_s12), 0  ;;  %p274_p9 = scmp.lt.s32.totalorder %s904_s8, 5 }
  0x11   : > { %1125 = sst [smem:[#allocation8_spill]] %s1140_s12  ;;  %p1010_p8 = por %p219_p6, %p218_p5 }
  0x12   : > { %s197_s16 = ssub.s32 %s900_s30, %s1140_s12  ;;  %s202_s17 = sadd.s32 1, %s884_s26 }
  0x13   : > { %s199_s18 = sor.u32 %s198_s13, %s197_s16  ;;  %p275_p10 = pnand %p698_p7, %p274_p9 }
  0x14   : > { %p200_p11 = scmp.eq.s32.totalorder %s199_s18, 0  ;;  %p317_p12 = scmp.lt.s32.totalorder (!%p275_p10), %s892_s28, 1  ;;  %v906_v0 = vmov (!%p275_p10), 0.0   ;;  %vm907_vm0 = vmmov (!%p275_p10), 0   ;;  %v908_v2 = vmov (!%p275_p10), 0   ;;  %v500_v3 = vld [vmem:[%s1114_s6] sm:$0xff] (!%p275_p10) }
  0x15   : > { %278 = sbr.rel (%p275_p10) target bundleno = 486 (0x1e6), region = 48  ;;  %p319_p13 = scmp.lt.s32.totalorder (!%p275_p10), %s888_s27, 1  ;;  %720 = vmatprep.subr.mxu0 (!%p275_p10), %v906_v0  ;;  %725 = vmatprep.subr.mxu1 (!%p275_p10), %v906_v0  ;;  %vm341_vm1 = vcmask (!%p275_p10), 1043456   ;;  %v336_v4 = vld [vmem:[%s1111_s3] sm:$0xff] (!%p275_p10)  ;;  %vm337_vm2 = vcmask (!%p275_p10), 31744   ;;  %vm506_vm3 = vcmask (!%p275_p10), 64512  }
  0x16   : > { %s1019_s19 = scalar_select %p200_p11, %s884_s26, %s202_s17  }
  0x17   : > { %s1127_s4 = sld [smem:[#allocation9_spill]] (!%p275_p10)  ;;  %722 = vmatprep.mubr.msk.f32.mxu0 (!%p275_p10), %vm907_vm0, %v906_v0  ;;  %727 = vmatprep.mubr.msk.f32.mxu1 (!%p275_p10), %vm907_vm0, %v906_v0  ;;  %v335_v5 = vld [vmem:[%s1110_s2] sm:$0xff] (!%p275_p10)  ;;  %s314_s30 = sand.u32 (!%p275_p10), 1, %s880_s25  }
  0x18   : > { %809 = vset.pattern.permute.xlu0 (!%p275_p10), %v908_v2  ;;  %v499_v16 = vld [vmem:[%s1113_s5] sm:$0xff] (!%p275_p10)  ;;  %s710_s12 = sshll.u32 (!%p275_p10), %s892_s28, 1 }
  0x1c   : > { %s318_s22 = scalar_select %p317_p12, %s892_s28, 1 }
  0x1d   : > { %v491_v1 = vld [vmem:[%s1127_s4] sm:$0xff]  ;;  %s320_s23 = scalar_select %p319_p13, %s888_s27, 1 }
  0x1e   : > { %s700_s9 = sshll.u32 %s318_s22, 1  ;;  %494 = vperm.xlu0 %809, %v491_v1  }
  0x1f   : > { %s322_s10 = sadd.s32 %s700_s9, %s320_s23  ;;  %s594_s9 = sadd.s32 %s888_s27, %s710_s12 }
  0x20   : > { %s701_s17 = sshll.u32 %s322_s10, 2  ;;  %s711_s10 = sshll.u32 %s594_s9, 7 }
  0x21   : > { %s332_s21 = scalar_lea.vmem %s1109_s1, %s701_s17  ;;  %s324_s11 = scalar_lea.vmem %s1108_s0, %s701_s17 }
  0x22   : > { %v334_v6 = vld [vmem:[%s332_s21] sm:$0xf]  ;;  %503 = vperm.xlu0 %809, %v500_v3   ;;  %s1055_s20 = scalar_lea.hbm %s1115_s7, %s711_s10  ;;  %s583_s27 = scalar_lea.sflag [#allocation3], %s314_s30 }
  0x23   : > { %v333_v7 = vld [vmem:[%s324_s11] sm:$0xf]  ;;  %721 = vmatpush3.msk.msra.mxu0 %vm341_vm1, %v334_v6  ;;  %s699_s11 = sshll.u32 %s314_s30, 3  ;;  %s909_s21 = smov [#allocation2]  }
  0x24   : > { %726 = vmatpush3.msk.msra.mxu1 %vm341_vm1, %v333_v7  ;;  %723 = vmatmul.mubr.msk.f32.vlgmr.msra.gmra.mrb[0].mxu0 %vm337_vm2, %v336_v4  ;;  %s316_s13 = scalar_lea.vmem [#allocation2], %s699_s11  ;;  %s814_s22 = sshll.u32 %s909_s21, 4  ;;  %s815_s22 = int_to_ptr.vmem [resolvable:$false] %s814_s22 }
  0x25   : > { %728 = vmatmul.mubr.msk.f32.vlgmr.msra.gmra.mrb[0].mxu1 %vm337_vm2, %v335_v5  ;;  %730 = vmatprep.subr.mxu0 %v906_v0  ;;  %s598_s16 = sshll.u32 %s316_s13, 4  ;;  %s816_s23 = scalar_lea.vmem %s815_s22, 256  ;;  %s1057_s16 = int_to_ptr.vmem [resolvable:$true] %s598_s16 }
  0x26   : > { %732 = vmatprep.mubr.msk.f32.mxu0 %vm907_vm0, %v906_v0  ;;  %s810_s28 = scalar_lea.vmem %s1057_s16, 128  ;;  %p817_p4 = scmp.lt.s32.totalorder %s1057_s16, %s815_s22 }
  0x27   : > { %p811_p0 = scmp.ne.s32.totalorder %s1057_s16, %s810_s28  ;;  %p818_p5 = scmp.lt.s32.totalorder %s816_s23, %s810_s28 }
  0x29   : > { %p812_p1 = pnand %p811_p0, %p1001_p3  ;;  %p819_p6 = por %p818_p5, %p817_p4 }
  0x2b   : > { %p813_p2 = pneg %p812_p1 }
  0x2d   : > { %p820_p7 = pnand %p819_p6, %p813_p2 }
  0x9d   : > { %v495_v13 = vpop.permute.xlu0 %494 }
  0xa1   : > { %v504_v17 = vpop.permute.xlu0 %503 }
  0xf7   : > { %v411_v8 = vpop.f32.mrb[0].mxu0 }
  0xf8   : > { %v487_v9 = vpop.f32.mrb[0].mxu1  ;;  %v724_v11 = vpop.f32.mrb[1].mxu0 }
  0xf9   : > { %v488_v10 = vadd.f32 %v487_v9, %v411_v8  ;;  %v729_v12 = vpop.f32.mrb[1].mxu1 }
  0xfb   : > { %v497_v14 = vadd.f32 %v495_v13, %v488_v10 }
  0xfd   : > { %v498_v15 = vmax.f32 %v497_v14, 0.0 }
  0xff   : > { %731 = vmatpush3.msra.mxu0 %v498_v15 }
 0x100   : > { %733 = vmatmul.mubr.msk.f32.vlgmr.msra.gmra.mrb[2].mxu0 %vm506_vm3, %v499_v16 }
 0x1d3   : > { %v576_v18 = vpop.f32.mrb[2].mxu0 }
 0x1d4   : > { %v577_v19 = vadd.f32 %v576_v18, %v504_v17  ;;  %v734_v20 = vpop.f32.mrb[3].mxu0 }
 0x1d6   : > { %v580_v21 = vmax.f32 %v577_v19, 0.0 }
 0x1d8   : > { %581 = vst [vmem:[%s316_s13] sm:$0xff] %v580_v21 }
 0x1d9   : > { %823 = shalt.err (!%p820_p7)
}
 0x1da   : > { %s824_s4 = scalar_lea.hbm %s1055_s20, 128  ;;  %s828_s11 = scalar_lea.hbm %s1115_s7, 512 }
 0x1db   : > { %p825_p9 = scmp.ne.s32.totalorder %s1055_s20, %s824_s4  ;;  %p829_p12 = scmp.lt.u32.totalorder %s1055_s20, %s1115_s7 }
 0x1dc   : > { %p830_p13 = scmp.lt.u32.totalorder %s828_s11, %s824_s4  ;;  %p832_p1 = scmp.lt.u32.totalorder %s824_s4, %s1055_s20 }
 0x1dd   : > { %p826_p10 = pnand %p825_p9, %p1001_p3 }
 0x1de   : > { %p831_p0 = por %p830_p13, %p829_p12 }
 0x1df   : > { %p827_p11 = pneg %p826_p10 }
 0x1e0   : > { %p833_p2 = por %p832_p1, %p831_p0 }
 0x1e2   : > { %p834_p4 = pnand %p833_p2, %p827_p11 }
 0x1e4   : > { %837 = shalt.err (!%p834_p4)
}
 0x1e5   : > { %735 = dma.vmem_to_hbm [thread:$0]  (%p1001_p3), %s1057_s16, 128, %s1055_s20, %s583_s27  }
 0x1e6 PF: > { %p741_p5 = scmp.ge.s32.totalorder %s904_s8, 2  ;;  %s610_s10 = sand.u32 1, %s876_s24  }
 0x1e7   : > { %s611_s13 = scalar_lea.sflag [#allocation3], %s610_s10 }
 0x1e8   : > { %p738_p6 = pnand %p741_p5, %p1010_p8 }
 0x1ea   : > { %871 = dma.done.wait (!%p738_p6), %s611_s13, 128  }
 0x1eb   : > { %873 = vsyncadd (!%p738_p6), %s611_s13, 4294967168  ;;  %s20_s8 = sadd.s32 1, %s904_s8   ;;  %s1128_s27 = sld [smem:[#allocation5_spill]] }
 0x1ec   : > { %p17_p7 = scmp.ge.s32.totalorder %s20_s8, 6   ;;  %s1129_s28 = sld [smem:[#allocation6_spill]] }
 0x1ed   : > { %s1130_s29 = sld [smem:[#allocation7_spill]]  ;;  %s1131_s30 = sld [smem:[#allocation8_spill]] }
 0x1ee   : > { %s1132_s24 = smov %s880_s25  ;;  %s1133_s25 = smov %s884_s26 }
 0x1ef   : > { %s1134_s26 = smov %s1019_s19  ;;  %19 = sbr.rel (!%p17_p7) target bundleno = 7 (0x7), region = 86 }
 0x1f6   :  { %616 = vsyncpa [#allocation3], 1 }
 0x1f7   :  { %618 = vsyncpa [#allocation3 + $0x1], 1 }

</bundles_post_ra>
